<compile_context>
chip_gen: v5e
topology: v5e:2x2
jax: 0.10.0
libtpu: 0.0.40
codegen_flags: <defaults>
</compile_context>

<pallas_src>
import jax
import jax.numpy as jnp
from jax.experimental import pallas as pl
from jax.experimental.pallas import tpu as pltpu


def _round_up(n: int, m: int) -> int:
    return ((n + m - 1) // m) * m


def make_kernel(idx_c: int, idx_d: int, idx_e: int, D: int, Dp: int):
    """Build the fused forward kernel for fixed (static) switch indices.

    Only one first-stage branch feeds the selected head, so only that branch is
    traced:
      idx_e == 0 -> output = power2(input_to_power2),  input selected by idx_c
      idx_e == 1 -> output = linear2(input_to_linear2), input selected by idx_d
    """
    sel = idx_c if idx_e == 0 else idx_d  # 0 -> power branch, 1 -> linear branch

    def kernel(pw_ref, sc_ref, x_ref, out_ref):
        # x_ref : (D, TB)  features on sublanes, batch on lanes (f32 or bf16)
        # pw_ref: (2*Dp, 1) rows [0, D) = p1 exponents, rows [Dp, Dp+D) = W1
        # sc_ref: SMEM (4,) = [b1, p2, w2, b2]
        x = x_ref[...].astype(jnp.float32)

        if sel == 0:
            # PowerActivation(D): prod_j x_j**p1_j == exp(sum_j p1_j * log x_j)
            # (requires strictly positive x -- the EQL power-unit domain).
            p1 = pw_ref[0:D, :]                                     # (D, 1)
            s = jnp.sum(jnp.log(x) * p1, axis=0, keepdims=True)     # (1, TB)
            if idx_e == 0:
                # Fused power-over-power: (exp(s)) ** p2 == exp(s * p2).
                out = jnp.exp(s * sc_ref[1])
            else:
                out = jnp.exp(s) * sc_ref[2] + sc_ref[3]
        else:
            # Linear(D, 1): VPU multiply + cross-sublane (XLU) reduce; no MXU.
            w1 = pw_ref[Dp:Dp + D, :]                               # (D, 1)
            inner = jnp.sum(x * w1, axis=0, keepdims=True) + sc_ref[0]
            if idx_e == 0:
                # TODO(synk): exp(p2*log(inner)) diverges from torch.pow when
                # inner <= 0 and p2 is an integer; callers must keep inner > 0.
                out = jnp.exp(jnp.log(inner) * sc_ref[1])
            else:
                out = inner * sc_ref[2] + sc_ref[3]

        out_ref[...] = out.astype(out_ref.dtype)                    # (1, TB)

    return kernel


def _choose_batch_tile(B: int):
    """Pick the lane-dense batch tile TB and number of grid steps."""
    if B <= 1024:
        return B, 1  # one full-array block; always layout-legal for any B
    # Aim for ~8 tiles (keeps both v7x TensorCores busy and the pipeline deep),
    # each at least 1024 lanes and at most 32768 lanes (~6-7 MiB of
    # double-buffered VMEM -> fits v5e's 16 MiB scoped default).
    TB = _round_up(pl.cdiv(B, 8), 128)
    TB = max(1024, min(TB, 32768))
    return TB, pl.cdiv(B, TB)


def sparse_composed_forward_fm(x_fm, params, idx_c, idx_d, idx_e):
    """Primary entry point.  x_fm: feature-major (D, B), float32 or bfloat16.

    x is consumed directly by the kernel -- no transpose, no pad, a single HBM
    read of x.  Returns (B, 1) float32.
    """
    D, B = x_fm.shape
    Dp = _round_up(D, 8)  # sublane-aligned stride for the packed p1/W1 block
    TB, n_tiles = _choose_batch_tile(B)

    # Pack p1 / W1 into one tiny sublane-aligned block (loop-invariant, resident).
    pw = jnp.zeros((2 * Dp, 1), jnp.float32)
    pw = pw.at[0:D, 0].set(jnp.asarray(params["p1"], jnp.float32).reshape(D))
    pw = pw.at[Dp:Dp + D, 0].set(jnp.asarray(params["w1"], jnp.float32).reshape(D))

    # True scalars -> single SMEM array: [b1, p2, w2, b2].
    scalars = jnp.stack([
        jnp.asarray(params["b1"], jnp.float32).reshape(()),
        jnp.asarray(params["p2"], jnp.float32).reshape(()),
        jnp.asarray(params["w2"], jnp.float32).reshape(()),
        jnp.asarray(params["b2"], jnp.float32).reshape(()),
    ])

    kernel = make_kernel(idx_c, idx_d, idx_e, D, Dp)

    out = pl.pallas_call(
        kernel,
        out_shape=jax.ShapeDtypeStruct((1, B), jnp.float32),
        grid=(n_tiles,),
        in_specs=[
            # Tiny loop-invariant parameter block: whole array resident in VMEM.
            pl.BlockSpec(memory_space=pltpu.MemorySpace.VMEM),
            # True scalars in SMEM (no padded (1,1) VMEM DMAs).
            pl.BlockSpec(memory_space=pltpu.MemorySpace.SMEM),
            # x: lane-dense batch tiles, auto double-buffered by the pipeline.
            pl.BlockSpec((D, TB), lambda i: (0, i)),
        ],
        out_specs=pl.BlockSpec((1, TB), lambda i: (0, i)),   # lane-dense output
        compiler_params=pltpu.CompilerParams(
            dimension_semantics=("parallel",)),
    )(pw, scalars, x_fm)

    return out.reshape(B, 1)


def sparse_composed_forward(x, params, idx_c, idx_d, idx_e):
    """Drop-in (B, D) entry point matching the PyTorch module signature.

    This performs one transpose to feature-major; producers that can emit x as
    (D, B) should call sparse_composed_forward_fm directly to avoid the extra
    HBM pass.
    """
    return sparse_composed_forward_fm(jnp.transpose(x), params, idx_c, idx_d, idx_e)


def reference_forward(x, params, idx_c, idx_d, idx_e):
    """Pure-JAX reference mirroring the PyTorch forward.  x: (B, D)."""
    x = x.astype(jnp.float32)
    power_out = jnp.prod(x ** params["p1"], axis=-1, keepdims=True)
    linear_out = x @ params["w1"].T + params["b1"][0, 0]
    input_to_power2 = power_out if idx_c == 0 else linear_out
    input_to_linear2 = power_out if idx_d == 0 else linear_out
    y3 = input_to_power2 ** params["p2"][0, 0]
    y4 = input_to_linear2 * params["w2"][0, 0] + params["b2"][0, 0]
    return y3 if idx_e == 0 else y4


if __name__ == "__main__":
    D = 16

    key = jax.random.PRNGKey(0)
    k_x, k_p1, k_w1, k_b1, k_w2, k_b2, k_x2 = jax.random.split(key, 7)

    params = {
        # PowerActivation exponents (module inits them to 1.0; use learned-like
        # values here so the log/exp path is exercised non-trivially).
        "p1": jax.random.uniform(k_p1, (1, D), jnp.float32, minval=0.5, maxval=1.5),
        "p2": jnp.full((1, 1), 1.25, jnp.float32),
        # nn.init.uniform_(., a=0.0, b=1.0) for both Linear layers.
        "w1": jax.random.uniform(k_w1, (1, D), jnp.float32, minval=0.0, maxval=1.0),
        "b1": jax.random.uniform(k_b1, (1, 1), jnp.float32, minval=0.0, maxval=1.0),
        "w2": jax.random.uniform(k_w2, (1, 1), jnp.float32, minval=0.0, maxval=1.0),
        "b2": jax.random.uniform(k_b2, (1, 1), jnp.float32, minval=0.0, maxval=1.0),
    }

    # Strictly positive inputs (domain of the power unit), produced directly in
    # the feature-major (D, B) layout the kernel consumes (no transpose on the
    # kernel path).
    B = 8
    x_fm = jax.random.uniform(k_x, (D, B), jnp.float32, minval=0.5, maxval=1.5)
    x_bd = jnp.transpose(x_fm)  # used only by the pure-JAX reference

    RTOL, ATOL = 5e-4, 1e-6

    # All four distinct traced paths (idx_e selects the head; the other switch
    # selects which first-stage output feeds it).
    for (idx_c, idx_d, idx_e) in [(0, 0, 0), (1, 1, 0), (0, 0, 1), (1, 1, 1)]:
        out = jax.block_until_ready(
            sparse_composed_forward_fm(x_fm, params, idx_c, idx_d, idx_e))
        ref = reference_forward(x_bd, params, idx_c, idx_d, idx_e)
        assert out.shape == (B, 1)
        assert jnp.allclose(out, ref, rtol=RTOL, atol=ATOL), (idx_c, idx_d, idx_e)

    # Drop-in (B, D) entry point (compatibility path; does one transpose).
    out = jax.block_until_ready(sparse_composed_forward(x_bd, params, 0, 1, 1))
    ref = reference_forward(x_bd, params, 0, 1, 1)
    assert jnp.allclose(out, ref, rtol=RTOL, atol=ATOL)

    # Multi-tile grid with a ragged final batch tile (exercises the parallel
    # batch grid, double-buffered pipelining and out-of-bounds block masking).
    B2 = 2000
    x2_fm = jax.random.uniform(k_x2, (D, B2), jnp.float32, minval=0.5, maxval=1.5)
    out2 = jax.block_until_ready(sparse_composed_forward_fm(x2_fm, params, 0, 1, 1))
    ref2 = reference_forward(jnp.transpose(x2_fm), params, 0, 1, 1)
    assert out2.shape == (B2, 1)
    assert jnp.allclose(out2, ref2, rtol=RTOL, atol=ATOL)

    # bfloat16 input (halves HBM read traffic); math stays in f32 in-kernel, so
    # it matches the reference computed on the same bf16-quantized values.
    x_bf = x_fm.astype(jnp.bfloat16)
    out_bf = jax.block_until_ready(sparse_composed_forward_fm(x_bf, params, 0, 0, 0))
    ref_bf = reference_forward(jnp.transpose(x_bf.astype(jnp.float32)), params, 0, 0, 0)
    assert jnp.allclose(out_bf, ref_bf, rtol=RTOL, atol=ATOL)

    print("KERNEL_OK")
</pallas_src>

<mosaic_0001>
module attributes {stable_mosaic.version = 11 : i64} {
  func.func @kernel(%arg0: i32, %arg1: memref<32x1xf32, #tpu.memory_space<vmem>>, %arg2: memref<4xf32, #tpu.memory_space<smem>>, %arg3: memref<16x8xf32, #tpu.memory_space<vmem>>, %arg4: memref<1x8xf32, #tpu.memory_space<vmem>>) attributes {dimension_semantics = [#tpu.dimension_semantics<parallel>], iteration_bounds = array<i64: 1>, scalar_prefetch = 0 : i64, scratch_operands = 0 : i64, tpu.core_type = #tpu.core_type<tc>, window_params = [{pipeline_mode = #tpu.pipeline_mode<synchronous>, transform_indices = @transform_0, window_bounds = array<i64: 32, 1>}, {transform_indices = @transform_1, window_bounds = array<i64: 4>}, {transform_indices = @transform_2, window_bounds = array<i64: 16, 8>}, {transform_indices = @transform_3, window_bounds = array<i64: 1, 8>}]} {
    %c0 = arith.constant 0 : index
    %c0_0 = arith.constant 0 : index
    %0 = vector.load %arg3[%c0, %c0_0] : memref<16x8xf32, #tpu.memory_space<vmem>>, vector<16x8xf32>
    %c0_1 = arith.constant 0 : index
    %c0_2 = arith.constant 0 : index
    %1 = vector.load %arg1[%c0_1, %c0_2] : memref<32x1xf32, #tpu.memory_space<vmem>>, vector<16x1xf32>
    %2 = math.log %0 : vector<16x8xf32>
    %3 = vector.broadcast %1 : vector<16x1xf32> to vector<16x8xf32>
    %4 = arith.mulf %2, %3 : vector<16x8xf32>
    %cst = arith.constant dense<0.000000e+00> : vector<8xf32>
    %5 = vector.multi_reduction <add>, %4, %cst [0] : vector<16x8xf32> to vector<8xf32>
    %6 = vector.shape_cast %5 : vector<8xf32> to vector<1x8xf32>
    %c1 = arith.constant 1 : index
    %7 = memref.load %arg2[%c1] : memref<4xf32, #tpu.memory_space<smem>>
    %8 = vector.broadcast %7 : f32 to vector<1x8xf32>
    %9 = arith.mulf %6, %8 : vector<1x8xf32>
    %10 = math.exp %9 : vector<1x8xf32>
    %c0_3 = arith.constant 0 : index
    %c0_4 = arith.constant 0 : index
    %11 = vector.load %arg4[%c0_3, %c0_4] : memref<1x8xf32, #tpu.memory_space<vmem>>, vector<1x8xf32>
    tpu.vector_store %arg4[%c0_3, %c0_4], %10 {strides = array<i32>} : memref<1x8xf32, #tpu.memory_space<vmem>>, vector<1x8xf32>,
    return
  }
  func.func @transform_0(%arg0: i32) -> (i32, i32) {
    %c0_i32 = arith.constant 0 : i32
    %c0_i32_0 = arith.constant 0 : i32
    %c0_i32_1 = arith.constant 0 : i32
    return %c0_i32, %c0_i32_0 : i32, i32
  }
  func.func @transform_1(%arg0: i32) -> i32 {
    %c0_i32 = arith.constant 0 : i32
    %c0_i32_0 = arith.constant 0 : i32
    return %c0_i32 : i32
  }
  func.func @transform_2(%arg0: i32) -> (i32, i32) {
    %c0_i32 = arith.constant 0 : i32
    %c0_i32_0 = arith.constant 0 : i32
    return %c0_i32, %arg0 : i32, i32
  }
  func.func @transform_3(%arg0: i32) -> (i32, i32) {
    %c0_i32 = arith.constant 0 : i32
    %c0_i32_0 = arith.constant 0 : i32
    return %c0_i32, %arg0 : i32, i32
  }
}

</mosaic_0001>

<bundles_post_ra>
// kernel: tpu_custom_call.1
= control target key start
LH: loop header
LB: loop body
LE: loop exit
PB: predicated region body
PF: predicated region fallthrough
CT: control target
= control target key end

     0   :  { %8 = vsyncpa [#allocation4], 0  ;;  %s174_s0 = inlined_call_operand.vmem [shape: f32[32,1], index: 0, kind: input, shape index: {}]   ;;  %s175_s1 = inlined_call_operand.vmem [shape: f32[4], index: 1, kind: input, shape index: {}]   ;;  %s176_s2 = inlined_call_operand.vmem [shape: f32[16,8], index: 2, kind: input, shape index: {}]   ;;  %s177_s3 = inlined_call_operand.hbm [shape: f32[1,8], index: 3, kind: output, shape index: {}]  }
   0x1   :  { %9 = vsyncpa [#allocation3], 0  ;;  %s17_s14 = sshll.u32 %s175_s1, 4  ;;  %s133_s15 = smov [#allocation2]   ;;  %s18_s14 = int_to_ptr.vmem [resolvable:$true] %s17_s14 }
   0x2   :  { %20 = dma.vmem_to_smem %s18_s14, 16, %s133_s15, [#allocation4]  }
   0x3   :  { %129 = dma.done.wait [#allocation4], 16  }
   0x4   :  { %130 = vsyncadd [#allocation4], 4294967280 }
   0x5   :  { %27 = sfence }
   0x6   :  { %v30_v0 = vld [vmem:[%s174_s0] sm:$0xff]  ;;  %v134_v1 = vmov 0   ;;  %v31_v2 = vld [vmem:[%s174_s0 + $0x8] sm:$0xff]  ;;  %vm48_vm0 = vcmask 64512   ;;  %s82_s0 = sld [smem:[#allocation2 + $0x1]]  ;;  %s72_s26 = sshll.u32 %s177_s3, 4  ;;  %s73_s26 = int_to_ptr.hbm [resolvable:$true] %s72_s26 }
   0x7   :  { %86 = vset.pattern.permute.xlu0 %v134_v1  ;;  %v28_v3 = vld [vmem:[%s176_s2] sm:$0xff]  ;;  %v29_v4 = vld [vmem:[%s176_s2 + $0x8] sm:$0xff]  ;;  %s135_s2 = smov [#allocation5]   ;;  %vm63_vm1 = vcmask 57344  }
   0x8   :  { %38 = vperm.xlu0 %86, %v30_v0   ;;  %87 = vlog2.f32 %v28_v3  ;;  %s70_s23 = sshll.u32 %s135_s2, 4  ;;  %s71_s23 = int_to_ptr.vmem [resolvable:$true] %s70_s23 }
   0x9   :  { %89 = vlog2.f32 %v29_v4 }
   0xc   :  { %v59_v21 = vstv %s82_s0 }
   0xe   :  { %v88_v5 = vpop.eup %87 }
   0xf   :  { %v90_v7 = vpop.eup %89  ;;  %v33_v8 = vmul.f32 0.6931472, %v88_v5 }
  0x10   :  { %43 = vperm.xlu0 %86, %v31_v2   ;;  %v35_v9 = vmul.f32 0.6931472, %v90_v7 }
  0x7a   :  { %v39_v6 = vpop.permute.xlu0 %38 }
  0x7b   :  { %v46_v10 = vmul.f32 %v39_v6, %v33_v8 }
  0x7d   :  { %v49_v13 = vsel %vm48_vm0, %v46_v10, 0.0 }
  0x82   :  { %v44_v11 = vpop.permute.xlu0 %43 }
  0x83   :  { %v47_v12 = vmul.f32 %v44_v11, %v35_v9 }
  0x85   :  { %v50_v14 = vsel %vm48_vm0, %v47_v12, 0.0 }
  0x86   :  { %v51_v15 = vadd.f32 %v50_v14, %v49_v13 }
  0x88   :  { %v52_v16 = vrot.slane %v51_v15, 4 }
  0x8a   :  { %v53_v17 = vadd.f32 %v52_v16, %v51_v15 }
  0x8c   :  { %v54_v18 = vrot.slane %v53_v17, 2 }
  0x8e   :  { %v55_v19 = vadd.f32 %v54_v18, %v53_v17 }
  0x90   :  { %v56_v20 = vrot.slane %v55_v19, 1 }
  0x92   :  { %v57_v22 = vadd.f32 %v56_v20, %v55_v19 }
  0x94   :  { %v60_v23 = vmul.f32 %v59_v21, %v57_v22 }
  0x96   :  { %v61_v24 = vmul.f32 1.442695, %v60_v23 }
  0x98   :  { %91 = vpow2.f32 %v61_v24 }
  0x9e   :  { %v92_v25 = vpop.eup %91 }
  0x9f   :  { %64 = vst.msk [vmem:[#allocation5] sm:$0x1] %vm63_vm1, %v92_v25 }
  0xa0   :  { %75 = dma.vmem_to_hbm [thread:$0]  %s71_s23, 16, %s73_s26, [#allocation3]  }
  0xa1   :  { %131 = dma.done.wait [#allocation3], 16  }
  0xa2   :  { %132 = vsyncadd [#allocation3], 4294967280 }
  0xa3   :  { %80 = vsyncpa [#allocation3], 1 }
  0xa4   :  { %81 = vsyncpa [#allocation4], 1 }

</bundles_post_ra>
